<compile_context>
chip_gen: v5e
topology: v5e:2x2
jax: 0.10.0
libtpu: 0.0.40
codegen_flags: <defaults>
</compile_context>

<pallas_src>
import functools

import jax
import jax.numpy as jnp
from jax import lax
from jax.experimental import pallas as pl
from jax.experimental.pallas import tpu as pltpu


def _contrastive_loss_kernel(im_i_ref, s_j_ref, s_i_ref, im_j_ref,
                             rowmax_s_ref, rowmax_im_ref,
                             *, margin, n_valid):
    i = pl.program_id(0)   # row-block index ("parallel")
    j = pl.program_id(1)   # col-block index (reduction axis, innermost, "arbitrary")

    im_i = im_i_ref[...]   # (TM, D)  native dtype, fed straight to the MXU
    s_j = s_j_ref[...]     # (TN, D)
    s_i = s_i_ref[...]     # (TM, D)
    im_j = im_j_ref[...]   # (TN, D)

    tm = im_i.shape[0]
    tn = s_j.shape[0]

    # Contract the embedding dim of both operands directly (no s.T materialized).
    contract = (((1,), (1,)), ((), ()))
    # scores tile of  im @ s.T : rows = im block i, cols = s block j
    scores_s = lax.dot_general(im_i, s_j, dimension_numbers=contract,
                               preferred_element_type=jnp.float32)
    # scores tile of  s @ im.T : rows = s block i, cols = im block j.
    # Its row-max (accumulated over j) is exactly cost_im.max(0) re-indexed by column.
    scores_im = lax.dot_general(s_i, im_j, dimension_numbers=contract,
                                preferred_element_type=jnp.float32)

    # diag[r] = im[r] . s[r] for the rows of block i  (O(T*D) VPU work)
    diag_r = jnp.sum(im_i.astype(jnp.float32) * s_i.astype(jnp.float32),
                     axis=1, keepdims=True)                      # (TM, 1)

    # Single mask: true diagonal + padded rows/cols -> large negative, hinge clamps to 0.
    row_g = i * tm + lax.broadcasted_iota(jnp.int32, (tm, tn), 0)
    col_g = j * tn + lax.broadcasted_iota(jnp.int32, (tm, tn), 1)
    invalid = (row_g == col_g) | (row_g >= n_valid) | (col_g >= n_valid)
    neg = jnp.float32(-1e30)
    m = jnp.float32(margin)

    cost_s = jnp.maximum(m + jnp.where(invalid, neg, scores_s) - diag_r, 0.0)
    cost_im = jnp.maximum(m + jnp.where(invalid, neg, scores_im) - diag_r, 0.0)

    tile_rmax_s = jnp.max(cost_s, axis=1, keepdims=True)    # (TM, 1)
    tile_rmax_im = jnp.max(cost_im, axis=1, keepdims=True)  # (TM, 1)

    # Running-max accumulators live in the resident output blocks (same block
    # index across the inner reduction axis j). Hinge costs are >= 0, so 0 is
    # the correct init (it also reproduces the reference's masked-diagonal 0).
    @pl.when(j == 0)
    def _():
        rowmax_s_ref[...] = jnp.zeros_like(rowmax_s_ref)
        rowmax_im_ref[...] = jnp.zeros_like(rowmax_im_ref)

    rowmax_s_ref[...] = jnp.maximum(rowmax_s_ref[...], tile_rmax_s)
    rowmax_im_ref[...] = jnp.maximum(rowmax_im_ref[...], tile_rmax_im)


def contrastive_loss(im, s, margin=0.0, block=None):
    """im: (B, D), s: (B, D) -> scalar loss (float32). Matches ContrastiveLoss.forward."""
    B, D = im.shape
    assert s.shape == (B, D)

    if block is None:
        # 128 suits the v5e MXU / small batches; 256 matches the v6e/v7x 2x256 MXU.
        block = 128 if B <= 128 else 256

    B_pad = -(-B // block) * block
    D_pad = -(-D // 128) * 128

    pad_b, pad_d = B_pad - B, D_pad - D
    if pad_b or pad_d:
        im_p = jnp.pad(im, ((0, pad_b), (0, pad_d)))
        s_p = jnp.pad(s, ((0, pad_b), (0, pad_d)))
    else:
        im_p, s_p = im, s

    num_i = B_pad // block
    num_j = B_pad // block

    kernel = functools.partial(_contrastive_loss_kernel,
                               margin=float(margin), n_valid=B)

    itemsize = jnp.dtype(im_p.dtype).itemsize
    cost = pl.CostEstimate(
        flops=4 * B_pad * B_pad * D_pad,                       # two T x T x D matmuls per tile
        bytes_accessed=4 * B_pad * D_pad * itemsize + 2 * B_pad * 4,
        transcendentals=0,
    )

    rmax_s, rmax_im = pl.pallas_call(
        kernel,
        out_shape=(jax.ShapeDtypeStruct((B_pad, 1), jnp.float32),
                   jax.ShapeDtypeStruct((B_pad, 1), jnp.float32)),
        grid_spec=pltpu.PrefetchScalarGridSpec(
            num_scalar_prefetch=0,
            grid=(num_i, num_j),
            in_specs=[
                pl.BlockSpec((block, D_pad), lambda i, j: (i, 0)),  # im rows of block i
                pl.BlockSpec((block, D_pad), lambda i, j: (j, 0)),  # s  rows of block j
                pl.BlockSpec((block, D_pad), lambda i, j: (i, 0)),  # s  rows of block i (diag / swapped lhs)
                pl.BlockSpec((block, D_pad), lambda i, j: (j, 0)),  # im rows of block j (swapped rhs)
            ],
            out_specs=[
                pl.BlockSpec((block, 1), lambda i, j: (i, 0)),
                pl.BlockSpec((block, 1), lambda i, j: (i, 0)),
            ],
        ),
        compiler_params=pltpu.CompilerParams(
            dimension_semantics=("parallel", "arbitrary")),
        cost_estimate=cost,
    )(im_p, s_p, s_p, im_p)

    # Tiny O(B) finalization outside the kernel.
    return jnp.sum(rmax_s[:B, 0]) + jnp.sum(rmax_im[:B, 0])


def _reference_loss(im, s, margin=0.0):
    scores = im @ s.T
    diag = jnp.diag(scores)[:, None]
    cost_s = jnp.maximum(margin + scores - diag, 0.0)
    cost_im = jnp.maximum(margin + scores - diag.T, 0.0)
    eye = jnp.eye(scores.shape[0], dtype=bool)
    cost_s = jnp.where(eye, 0.0, cost_s)
    cost_im = jnp.where(eye, 0.0, cost_im)
    return jnp.sum(jnp.max(cost_s, axis=1)) + jnp.sum(jnp.max(cost_im, axis=0))


if __name__ == "__main__":
    key = jax.random.PRNGKey(0)
    k_im, k_s = jax.random.split(key)
    B, D = 8, 32
    # L2-normalized embeddings (cosine_sim assumes normalized inputs)
    im = jax.random.normal(k_im, (B, D), dtype=jnp.float32)
    s = jax.random.normal(k_s, (B, D), dtype=jnp.float32)
    im = im / jnp.linalg.norm(im, axis=1, keepdims=True)
    s = s / jnp.linalg.norm(s, axis=1, keepdims=True)

    margin = 0.2
    loss = contrastive_loss(im, s, margin=margin)
    jax.block_until_ready(loss)

    ref = _reference_loss(im, s, margin=margin)
    assert jnp.allclose(loss, ref, atol=1e-5, rtol=1e-5), (loss, ref)
    print("KERNEL_OK")
</pallas_src>

<mosaic_0001>
module attributes {stable_mosaic.version = 11 : i64} {
  func.func @_contrastive_loss_kernel(%arg0: i32, %arg1: i32, %arg2: memref<128x128xf32, #tpu.memory_space<vmem>>, %arg3: memref<128x128xf32, #tpu.memory_space<vmem>>, %arg4: memref<128x128xf32, #tpu.memory_space<vmem>>, %arg5: memref<128x128xf32, #tpu.memory_space<vmem>>, %arg6: memref<128x1xf32, #tpu.memory_space<vmem>>, %arg7: memref<128x1xf32, #tpu.memory_space<vmem>>) attributes {dimension_semantics = [#tpu.dimension_semantics<parallel>, #tpu.dimension_semantics<arbitrary>], iteration_bounds = array<i64: 1, 1>, scalar_prefetch = 0 : i64, scratch_operands = 0 : i64, tpu.core_type = #tpu.core_type<tc>, window_params = [{transform_indices = @transform_0, window_bounds = array<i64: 128, 128>}, {transform_indices = @transform_1, window_bounds = array<i64: 128, 128>}, {transform_indices = @transform_2, window_bounds = array<i64: 128, 128>}, {transform_indices = @transform_3, window_bounds = array<i64: 128, 128>}, {transform_indices = @transform_4, window_bounds = array<i64: 128, 1>}, {transform_indices = @transform_5, window_bounds = array<i64: 128, 1>}]} {
    %c0 = arith.constant 0 : index
    %c0_0 = arith.constant 0 : index
    %0 = vector.load %arg2[%c0, %c0_0] : memref<128x128xf32, #tpu.memory_space<vmem>>, vector<128x128xf32>
    %c0_1 = arith.constant 0 : index
    %c0_2 = arith.constant 0 : index
    %1 = vector.load %arg3[%c0_1, %c0_2] : memref<128x128xf32, #tpu.memory_space<vmem>>, vector<128x128xf32>
    %c0_3 = arith.constant 0 : index
    %c0_4 = arith.constant 0 : index
    %2 = vector.load %arg4[%c0_3, %c0_4] : memref<128x128xf32, #tpu.memory_space<vmem>>, vector<128x128xf32>
    %c0_5 = arith.constant 0 : index
    %c0_6 = arith.constant 0 : index
    %3 = vector.load %arg5[%c0_5, %c0_6] : memref<128x128xf32, #tpu.memory_space<vmem>>, vector<128x128xf32>
    %cst = arith.constant dense<0.000000e+00> : vector<128x128xf32>
    %4 = tpu.matmul %0, %1, %cst {dimension_numbers = #tpu.dot_dimension_numbers<[1], [1], [0], [0], [0, 0, 1, 0], [], []>} : vector<128x128xf32>, vector<128x128xf32>, vector<128x128xf32> -> vector<128x128xf32>
    %cst_7 = arith.constant dense<0.000000e+00> : vector<128x128xf32>
    %5 = tpu.matmul %2, %3, %cst_7 {dimension_numbers = #tpu.dot_dimension_numbers<[1], [1], [0], [0], [0, 0, 1, 0], [], []>} : vector<128x128xf32>, vector<128x128xf32>, vector<128x128xf32> -> vector<128x128xf32>
    %6 = arith.mulf %0, %2 : vector<128x128xf32>
    %cst_8 = arith.constant dense<0.000000e+00> : vector<128xf32>
    %7 = vector.multi_reduction <add>, %6, %cst_8 [1] : vector<128x128xf32> to vector<128xf32>
    %8 = vector.shape_cast %7 : vector<128xf32> to vector<128x1xf32>
    %c128_i32 = arith.constant 128 : i32
    %9 = arith.muli %arg0, %c128_i32 : i32
    %10 = tpu.iota {dimensions = array<i32: 0>} : vector<128x128xi32>
    %11 = vector.broadcast %9 : i32 to vector<128x128xi32>
    %12 = arith.addi %11, %10 : vector<128x128xi32>
    %c128_i32_9 = arith.constant 128 : i32
    %13 = arith.muli %arg1, %c128_i32_9 : i32
    %14 = tpu.iota {dimensions = array<i32: 1>} : vector<128x128xi32>
    %15 = vector.broadcast %13 : i32 to vector<128x128xi32>
    %16 = arith.addi %15, %14 : vector<128x128xi32>
    %17 = arith.cmpi eq, %12, %16 : vector<128x128xi32>
    %c8_i32 = arith.constant 8 : i32
    %18 = vector.broadcast %c8_i32 : i32 to vector<128x128xi32>
    %19 = arith.cmpi sge, %12, %18 : vector<128x128xi32>
    %20 = arith.ori %17, %19 : vector<128x128xi1>
    %c8_i32_10 = arith.constant 8 : i32
    %21 = vector.broadcast %c8_i32_10 : i32 to vector<128x128xi32>
    %22 = arith.cmpi sge, %16, %21 : vector<128x128xi32>
    %23 = arith.ori %20, %22 : vector<128x128xi1>
    %cst_11 = arith.constant -1.000000e+30 : f32
    %24 = vector.broadcast %cst_11 : f32 to vector<128x128xf32>
    %25 = arith.select %23, %24, %4 : vector<128x128xi1>, vector<128x128xf32>
    %cst_12 = arith.constant 2.000000e-01 : f32
    %26 = vector.broadcast %cst_12 : f32 to vector<128x128xf32>
    %27 = arith.addf %26, %25 : vector<128x128xf32>
    %28 = vector.broadcast %8 : vector<128x1xf32> to vector<128x128xf32>
    %29 = arith.subf %27, %28 : vector<128x128xf32>
    %cst_13 = arith.constant 0.000000e+00 : f32
    %30 = vector.broadcast %cst_13 : f32 to vector<128x128xf32>
    %31 = arith.maximumf %29, %30 : vector<128x128xf32>
    %cst_14 = arith.constant -1.000000e+30 : f32
    %32 = vector.broadcast %cst_14 : f32 to vector<128x128xf32>
    %33 = arith.select %23, %32, %5 : vector<128x128xi1>, vector<128x128xf32>
    %cst_15 = arith.constant 2.000000e-01 : f32
    %34 = vector.broadcast %cst_15 : f32 to vector<128x128xf32>
    %35 = arith.addf %34, %33 : vector<128x128xf32>
    %36 = vector.broadcast %8 : vector<128x1xf32> to vector<128x128xf32>
    %37 = arith.subf %35, %36 : vector<128x128xf32>
    %cst_16 = arith.constant 0.000000e+00 : f32
    %38 = vector.broadcast %cst_16 : f32 to vector<128x128xf32>
    %39 = arith.maximumf %37, %38 : vector<128x128xf32>
    %cst_17 = arith.constant dense<0xFF800000> : vector<128xf32>
    %40 = vector.multi_reduction <maximumf>, %31, %cst_17 [1] : vector<128x128xf32> to vector<128xf32>
    %41 = vector.shape_cast %40 : vector<128xf32> to vector<128x1xf32>
    %cst_18 = arith.constant dense<0xFF800000> : vector<128xf32>
    %42 = vector.multi_reduction <maximumf>, %39, %cst_18 [1] : vector<128x128xf32> to vector<128xf32>
    %43 = vector.shape_cast %42 : vector<128xf32> to vector<128x1xf32>
    %c0_i32 = arith.constant 0 : i32
    %44 = arith.cmpi eq, %arg1, %c0_i32 : i32
    %45 = arith.extui %44 : i1 to i32
    %c0_i32_19 = arith.constant 0 : i32
    %46 = arith.cmpi ne, %45, %c0_i32_19 : i32
    scf.if %46 {
      %cst_28 = arith.constant 0.000000e+00 : f32
      %53 = vector.broadcast %cst_28 : f32 to vector<128x1xf32>
      %c0_29 = arith.constant 0 : index
      %c0_30 = arith.constant 0 : index
      %54 = vector.load %arg6[%c0_29, %c0_30] : memref<128x1xf32, #tpu.memory_space<vmem>>, vector<128x1xf32>
      tpu.vector_store %arg6[%c0_29, %c0_30], %53 {strides = array<i32>} : memref<128x1xf32, #tpu.memory_space<vmem>>, vector<128x1xf32>,
      %cst_31 = arith.constant 0.000000e+00 : f32
      %55 = vector.broadcast %cst_31 : f32 to vector<128x1xf32>
      %c0_32 = arith.constant 0 : index
      %c0_33 = arith.constant 0 : index
      %56 = vector.load %arg7[%c0_32, %c0_33] : memref<128x1xf32, #tpu.memory_space<vmem>>, vector<128x1xf32>
      tpu.vector_store %arg7[%c0_32, %c0_33], %55 {strides = array<i32>} : memref<128x1xf32, #tpu.memory_space<vmem>>, vector<128x1xf32>,
    } else {
    }
    %c0_20 = arith.constant 0 : index
    %c0_21 = arith.constant 0 : index
    %47 = vector.load %arg6[%c0_20, %c0_21] : memref<128x1xf32, #tpu.memory_space<vmem>>, vector<128x1xf32>
    %48 = arith.maximumf %47, %41 : vector<128x1xf32>
    %c0_22 = arith.constant 0 : index
    %c0_23 = arith.constant 0 : index
    %49 = vector.load %arg6[%c0_22, %c0_23] : memref<128x1xf32, #tpu.memory_space<vmem>>, vector<128x1xf32>
    tpu.vector_store %arg6[%c0_22, %c0_23], %48 {strides = array<i32>} : memref<128x1xf32, #tpu.memory_space<vmem>>, vector<128x1xf32>,
    %c0_24 = arith.constant 0 : index
    %c0_25 = arith.constant 0 : index
    %50 = vector.load %arg7[%c0_24, %c0_25] : memref<128x1xf32, #tpu.memory_space<vmem>>, vector<128x1xf32>
    %51 = arith.maximumf %50, %43 : vector<128x1xf32>
    %c0_26 = arith.constant 0 : index
    %c0_27 = arith.constant 0 : index
    %52 = vector.load %arg7[%c0_26, %c0_27] : memref<128x1xf32, #tpu.memory_space<vmem>>, vector<128x1xf32>
    tpu.vector_store %arg7[%c0_26, %c0_27], %51 {strides = array<i32>} : memref<128x1xf32, #tpu.memory_space<vmem>>, vector<128x1xf32>,
    return
  }
  func.func @transform_0(%arg0: i32, %arg1: i32) -> (i32, i32) {
    %c0_i32 = arith.constant 0 : i32
    %c0_i32_0 = arith.constant 0 : i32
    return %arg0, %c0_i32 : i32, i32
  }
  func.func @transform_1(%arg0: i32, %arg1: i32) -> (i32, i32) {
    %c0_i32 = arith.constant 0 : i32
    %c0_i32_0 = arith.constant 0 : i32
    return %arg1, %c0_i32 : i32, i32
  }
  func.func @transform_2(%arg0: i32, %arg1: i32) -> (i32, i32) {
    %c0_i32 = arith.constant 0 : i32
    %c0_i32_0 = arith.constant 0 : i32
    return %arg0, %c0_i32 : i32, i32
  }
  func.func @transform_3(%arg0: i32, %arg1: i32) -> (i32, i32) {
    %c0_i32 = arith.constant 0 : i32
    %c0_i32_0 = arith.constant 0 : i32
    return %arg1, %c0_i32 : i32, i32
  }
  func.func @transform_4(%arg0: i32, %arg1: i32) -> (i32, i32) {
    %c0_i32 = arith.constant 0 : i32
    %c0_i32_0 = arith.constant 0 : i32
    return %arg0, %c0_i32 : i32, i32
  }
  func.func @transform_5(%arg0: i32, %arg1: i32) -> (i32, i32) {
    %c0_i32 = arith.constant 0 : i32
    %c0_i32_0 = arith.constant 0 : i32
    return %arg0, %c0_i32 : i32, i32
  }
}

</mosaic_0001>

<bundles_post_ra>
// kernel: tpu_custom_call.1
= control target key start
LH: loop header
LB: loop body
LE: loop exit
PB: predicated region body
PF: predicated region fallthrough
CT: control target
= control target key end

     0   :  { %11 = vsyncpa [#allocation3], 0  ;;  %s1484_s0 = inlined_call_operand.hbm [shape: f32[128,128], index: 0, kind: input, shape index: {}]   ;;  %s1485_s1 = inlined_call_operand.hbm [shape: f32[128,128], index: 1, kind: input, shape index: {}]   ;;  %s1486_s2 = inlined_call_operand.hbm [shape: f32[128,128], index: 2, kind: input, shape index: {}]   ;;  %s1487_s3 = inlined_call_operand.hbm [shape: f32[128,128], index: 3, kind: input, shape index: {}]   ;;  %s1488_s4 = inlined_call_operand.vmem [shape: f32[128,1], index: 4, kind: output, shape index: {0}]   ;;  %s1489_s5 = inlined_call_operand.vmem [shape: f32[128,1], index: 5, kind: output, shape index: {1}]  }
   0x1   :  { %12 = vsyncpa [#allocation5], 0 }
   0x2   :  { %13 = vsyncpa [#allocation8], 0  ;;  %s31_s20 = sshll.u32 %s1485_s1, 4  ;;  %s907_s21 = smov [#allocation4]   ;;  %s32_s20 = int_to_ptr.hbm [resolvable:$true] %s31_s20 }
   0x3   :  { %s33_s22 = sshll.u32 %s907_s21, 4  ;;  %s18_s25 = sshll.u32 %s1484_s0, 4  ;;  %s34_s22 = int_to_ptr.vmem [resolvable:$true] %s33_s22  ;;  %s19_s25 = int_to_ptr.hbm [resolvable:$true] %s18_s25 }
   0x4   :  { %s908_s26 = smov 128   ;;  %s909_s27 = smov 8  }
   0x5   :  { %39 = dma.hbm_to_vmem [thread:$0]  %s32_s20, 2048, %s34_s22, [#allocation5], %s908_s26, %s908_s26, %s909_s27  }
   0x6   :  { %s910_s28 = smov [#allocation2]   ;;  %s44_s7 = sshll.u32 %s1486_s2, 4  ;;  %s45_s7 = int_to_ptr.hbm [resolvable:$true] %s44_s7 }
   0x7   :  { %s20_s29 = sshll.u32 %s910_s28, 4  ;;  %s57_s9 = sshll.u32 %s1487_s3, 4  ;;  %s21_s29 = int_to_ptr.vmem [resolvable:$true] %s20_s29  ;;  %s58_s9 = int_to_ptr.hbm [resolvable:$true] %s57_s9 }
   0x8   :  { %26 = dma.hbm_to_vmem [thread:$0]  %s19_s25, 2048, %s21_s29, [#allocation3], %s908_s26, %s908_s26, %s909_s27  }
   0x9   :  { %s911_s10 = smov [#allocation6]   ;;  %s912_s0 = smov [#allocation7]  }
   0xa   :  { %s46_s11 = sshll.u32 %s911_s10, 4  ;;  %s59_s12 = sshll.u32 %s912_s0, 4  ;;  %s47_s11 = int_to_ptr.vmem [resolvable:$true] %s46_s11  ;;  %s60_s12 = int_to_ptr.vmem [resolvable:$true] %s59_s12 }
   0xb   :  { %52 = dma.hbm_to_vmem [thread:$0]  %s45_s7, 2048, %s47_s11, [#allocation5], %s908_s26, %s908_s26, %s909_s27  }
   0xc   :  { %65 = dma.hbm_to_vmem [thread:$0]  %s58_s9, 2048, %s60_s12, [#allocation8], %s908_s26, %s908_s26, %s909_s27  }
   0xd   :  { %901 = dma.done.wait [#allocation3], 2048  }
   0xe   :  { %902 = vsyncadd [#allocation3], 4294965248 }
   0xf   :  { %903 = dma.done.wait [#allocation5], 4096  }
  0x10   :  { %904 = vsyncadd [#allocation5], 4294963200 }
  0x11   :  { %905 = dma.done.wait [#allocation8], 2048  }
  0x12   :  { %906 = vsyncadd [#allocation8], 4294965248  ;;  %v113_v0 = vld [vmem:[#allocation4 + $0x78] sm:$0xff]  ;;  %v956_v2 = vld [vmem:[#allocation2 + $0x20] sm:$0xff]  ;;  %vm625_vm0 = vcmask 7168  }
  0x13   :  { %v145_v1 = vld [vmem:[#allocation7 + $0x78] sm:$0xff]  ;;  %146 = vmatpush.xpose.msra.mxu0 %v113_v0  ;;  %v958_v3 = vld [vmem:[#allocation6 + $0x20] sm:$0xff]  ;;  %v960_v4 = vld [vmem:[#allocation2 + $0x10] sm:$0xff]  ;;  %766 = vmatpush.xpose.msra.mxu2 %v113_v0 }
  0x14   :  { %211 = vmatpush.xpose.msra.mxu1 %v145_v1  ;;  %v962_v5 = vld [vmem:[#allocation6 + $0x10] sm:$0xff]  ;;  %v280_v6 = vmul.f32 %v958_v3, %v956_v2  ;;  %v968_v8 = vld [vmem:[#allocation2] sm:$0xff]  ;;  %782 = vmatpush.xpose.msra.mxu3 %v145_v1  ;;  %v974_v13 = vld [vmem:[#allocation2 + $0x28] sm:$0xff] }
  0x15   :  { %v278_v7 = vmul.f32 %v962_v5, %v960_v4  ;;  %v970_v9 = vld [vmem:[#allocation6] sm:$0xff]  ;;  %v112_v10 = vld [vmem:[#allocation4 + $0x70] sm:$0xff]  ;;  %v976_v14 = vld [vmem:[#allocation6 + $0x28] sm:$0xff] }
  0x16   :  { %v276_v11 = vmul.f32 %v970_v9, %v968_v8  ;;  %v144_v12 = vld [vmem:[#allocation7 + $0x70] sm:$0xff]  ;;  %300 = vadd.xlane.f32.xlu2 %v280_v6  ;;  %v978_v15 = vld [vmem:[#allocation2 + $0x18] sm:$0xff]  ;;  %v111_v17 = vld [vmem:[#allocation4 + $0x68] sm:$0xff]  ;;  %v281_v21 = vmul.f32 %v976_v14, %v974_v13 }
  0x17   :  { %296 = vadd.xlane.f32.xlu1 %v278_v7  ;;  %147 = vmatpush.xpose.msra.mxu0 %v112_v10  ;;  %v980_v16 = vld [vmem:[#allocation6 + $0x18] sm:$0xff]  ;;  %v982_v18 = vld [vmem:[#allocation2 + $0x8] sm:$0xff]  ;;  %v110_v24 = vld [vmem:[#allocation4 + $0x60] sm:$0xff] }
  0x18   :  { %292 = vadd.xlane.f32.xlu0 %v276_v11  ;;  %212 = vmatpush.xpose.msra.mxu1 %v144_v12  ;;  %v984_v19 = vld [vmem:[#allocation6 + $0x8] sm:$0xff]  ;;  %v279_v22 = vmul.f32 %v980_v16, %v978_v15  ;;  %v142_v25 = vld [vmem:[#allocation7 + $0x60] sm:$0xff]  ;;  %v996_v28 = vld [vmem:[#allocation2 + $0x38] sm:$0xff] }
  0x19   :  { %767 = vmatpush.xpose.msra.mxu2 %v112_v10  ;;  %v143_v20 = vld [vmem:[#allocation7 + $0x68] sm:$0xff]  ;;  %783 = vmatpush.xpose.msra.mxu3 %v144_v12  ;;  %v277_v23 = vmul.f32 %v984_v19, %v982_v18  ;;  %v992_v26 = vld [vmem:[#allocation2 + $0x40] sm:$0xff]  ;;  %v998_v29 = vld [vmem:[#allocation6 + $0x38] sm:$0xff] }
  0x1a   :  { %v994_v27 = vld [vmem:[#allocation6 + $0x40] sm:$0xff]  ;;  %v109_v30 = vld [vmem:[#allocation4 + $0x58] sm:$0xff]  ;;  %v1000_v31 = vld [vmem:[#allocation2 + $0x30] sm:$0xff]  ;;  %v283_v35 = vmul.f32 %v998_v29, %v996_v28 }
  0x1b   :  { %148 = vmatpush.xpose.msra.mxu0 %v111_v17  ;;  %v1002_v32 = vld [vmem:[#allocation6 + $0x30] sm:$0xff]  ;;  %v141_v33 = vld [vmem:[#allocation7 + $0x58] sm:$0xff]  ;;  %v284_v34 = vmul.f32 %v994_v27, %v992_v26  ;;  %v107_v43 = vld [vmem:[#allocation4 + $0x48] sm:$0xff] }
  0x1c   :  { %213 = vmatpush.xpose.msra.mxu1 %v143_v20  ;;  %v282_v36 = vmul.f32 %v1002_v32, %v1000_v31  ;;  %v108_v37 = vld [vmem:[#allocation4 + $0x50] sm:$0xff]  ;;  %v1010_v39 = vld [vmem:[#allocation2 + $0x58] sm:$0xff]  ;;  %v1018_v44 = vld [vmem:[#allocation2 + $0x48] sm:$0xff] }
  0x1d   :  { %768 = vmatpush.xpose.msra.mxu2 %v111_v17  ;;  %784 = vmatpush.xpose.msra.mxu3 %v143_v20  ;;  %v140_v38 = vld [vmem:[#allocation7 + $0x50] sm:$0xff]  ;;  %v1012_v40 = vld [vmem:[#allocation6 + $0x58] sm:$0xff]  ;;  %v1020_v45 = vld [vmem:[#allocation6 + $0x48] sm:$0xff] }
  0x1e   :  { %302 = vadd.xlane.f32.xlu2 %v281_v21  ;;  %v1014_v41 = vld [vmem:[#allocation2 + $0x50] sm:$0xff]  ;;  %v139_v46 = vld [vmem:[#allocation7 + $0x48] sm:$0xff]  ;;  %v287_v47 = vmul.f32 %v1012_v40, %v1010_v39  ;;  %v285_v49 = vmul.f32 %v1020_v45, %v1018_v44  ;;  %v106_v50 = vld [vmem:[#allocation4 + $0x40] sm:$0xff] }
  0x1f   :  { %298 = vadd.xlane.f32.xlu1 %v279_v22  ;;  %149 = vmatpush.xpose.msra.mxu0 %v110_v24  ;;  %v1016_v42 = vld [vmem:[#allocation6 + $0x50] sm:$0xff]  ;;  %v138_v51 = vld [vmem:[#allocation7 + $0x40] sm:$0xff]  ;;  %v1032_v54 = vld [vmem:[#allocation2 + $0x68] sm:$0xff] }
  0x20   :  { %294 = vadd.xlane.f32.xlu0 %v277_v23  ;;  %214 = vmatpush.xpose.msra.mxu1 %v142_v25  ;;  %v286_v48 = vmul.f32 %v1016_v42, %v1014_v41  ;;  %v1028_v52 = vld [vmem:[#allocation2 + $0x70] sm:$0xff]  ;;  %v1034_v55 = vld [vmem:[#allocation6 + $0x68] sm:$0xff]  ;;  %v105_v56 = vld [vmem:[#allocation4 + $0x38] sm:$0xff] }
  0x21   :  { %769 = vmatpush.xpose.msra.mxu2 %v110_v24  ;;  %785 = vmatpush.xpose.msra.mxu3 %v142_v25  ;;  %v1030_v53 = vld [vmem:[#allocation6 + $0x70] sm:$0xff]  ;;  %v1036_v57 = vld [vmem:[#allocation2 + $0x60] sm:$0xff]  ;;  %v137_v59 = vld [vmem:[#allocation7 + $0x38] sm:$0xff]  ;;  %v289_v61 = vmul.f32 %v1034_v55, %v1032_v54 }
  0x22   :  { %v1038_v58 = vld [vmem:[#allocation6 + $0x60] sm:$0xff]  ;;  %v290_v60 = vmul.f32 %v1030_v53, %v1028_v52  ;;  %v104_v63 = vld [vmem:[#allocation4 + $0x30] sm:$0xff]  ;;  %v103_v1 = vld [vmem:[#allocation4 + $0x28] sm:$0xff] }
  0x23   :  { %150 = vmatpush.xpose.msra.mxu0 %v109_v30  ;;  %v288_v62 = vmul.f32 %v1038_v58, %v1036_v57  ;;  %v136_v0 = vld [vmem:[#allocation7 + $0x30] sm:$0xff]  ;;  %v1046_v6 = vld [vmem:[#allocation2 + $0x78] sm:$0xff]  ;;  %v135_v10 = vld [vmem:[#allocation7 + $0x28] sm:$0xff] }
  0x24   :  { %215 = vmatpush.xpose.msra.mxu1 %v141_v33  ;;  %v1048_v7 = vld [vmem:[#allocation6 + $0x78] sm:$0xff]  ;;  %v102_v12 = vld [vmem:[#allocation4 + $0x20] sm:$0xff]  ;;  %v100_v22 = vld [vmem:[#allocation4 + $0x10] sm:$0xff] }
  0x25   :  { %770 = vmatpush.xpose.msra.mxu2 %v109_v30  ;;  %786 = vmatpush.xpose.msra.mxu3 %v141_v33  ;;  %v291_v11 = vmul.f32 %v1048_v7, %v1046_v6  ;;  %v134_v17 = vld [vmem:[#allocation7 + $0x20] sm:$0xff]  ;;  %v101_v20 = vld [vmem:[#allocation4 + $0x18] sm:$0xff]  ;;  %v132_v23 = vld [vmem:[#allocation7 + $0x10] sm:$0xff] }
  0x26   :  { %308 = vadd.xlane.f32.xlu2 %v284_v34  ;;  %v133_v21 = vld [vmem:[#allocation7 + $0x18] sm:$0xff]  ;;  %v99_v24 = vld [vmem:[#allocation4 + $0x8] sm:$0xff]  ;;  %v98_v30 = vld [vmem:[#allocation4] sm:$0xff] }
  0x27   :  { %306 = vadd.xlane.f32.xlu1 %v283_v35  ;;  %151 = vmatpush.xpose.msra.mxu0 %v108_v37  ;;  %v131_v25 = vld [vmem:[#allocation7 + $0x8] sm:$0xff]  ;;  %v130_v33 = vld [vmem:[#allocation7] sm:$0xff] }
  0x28   :  { %304 = vadd.xlane.f32.xlu0 %v282_v36  ;;  %216 = vmatpush.xpose.msra.mxu1 %v140_v38 }
  0x29   :  { %771 = vmatpush.xpose.msra.mxu2 %v108_v37  ;;  %787 = vmatpush.xpose.msra.mxu3 %v140_v38 }
  0x2b   :  { %152 = vmatpush.xpose.msra.mxu0 %v107_v43 }
  0x2c   :  { %217 = vmatpush.xpose.msra.mxu1 %v139_v46 }
  0x2d   :  { %772 = vmatpush.xpose.msra.mxu2 %v107_v43  ;;  %788 = vmatpush.xpose.msra.mxu3 %v139_v46 }
  0x2e   :  { %314 = vadd.xlane.f32.xlu2 %v287_v47 }
  0x2f   :  { %312 = vadd.xlane.f32.xlu1 %v286_v48  ;;  %153 = vmatpush.xpose.msra.mxu0 %v106_v50 }
  0x30   :  { %310 = vadd.xlane.f32.xlu0 %v285_v49  ;;  %218 = vmatpush.xpose.msra.mxu1 %v138_v51 }
  0x31   :  { %773 = vmatpush.xpose.msra.mxu2 %v106_v50  ;;  %789 = vmatpush.xpose.msra.mxu3 %v138_v51 }
  0x33   :  { %154 = vmatpush.xpose.msra.mxu0 %v105_v56 }
  0x34   :  { %219 = vmatpush.xpose.msra.mxu1 %v137_v59 }
  0x35   :  { %774 = vmatpush.xpose.msra.mxu2 %v105_v56  ;;  %790 = vmatpush.xpose.msra.mxu3 %v137_v59 }
  0x36   :  { %320 = vadd.xlane.f32.xlu2 %v290_v60 }
  0x37   :  { %318 = vadd.xlane.f32.xlu1 %v289_v61  ;;  %155 = vmatpush.xpose.msra.mxu0 %v104_v63 }
  0x38   :  { %316 = vadd.xlane.f32.xlu0 %v288_v62  ;;  %220 = vmatpush.xpose.msra.mxu1 %v136_v0  ;;  %v325_v62 = vlaneseq }
  0x39   :  { %775 = vmatpush.xpose.msra.mxu2 %v104_v63  ;;  %791 = vmatpush.xpose.msra.mxu3 %v136_v0 }
  0x3a   :  { %v326_v63 = vshrl.u32 %v325_v62, 7  ;;  %v361_v0 = vand.u32 127, %v325_v62 }
  0x3b   :  { %156 = vmatpush.xpose.msra.mxu0 %v103_v1 }
  0x3c   :  { %221 = vmatpush.xpose.msra.mxu1 %v135_v10  ;;  %vm364_vm1 = vcmp.eq.s32.totalorder %v326_v63, %v361_v0  ;;  %vm412_vm2 = vcmp.ge.s32.totalorder %v361_v0, 8 }
  0x3d   :  { %776 = vmatpush.xpose.msra.mxu2 %v103_v1  ;;  %792 = vmatpush.xpose.msra.mxu3 %v135_v10  ;;  %v913_v1 = vmov 0.0   ;;  %vm413_vm3 = vmor %vm364_vm1, %vm412_vm2 }
  0x3e   :  { %628 = vst.msk [vmem:[%s1488_s4 + $0x10] sm:$0xff] %vm625_vm0, %v913_v1 }
  0x3f   :  { %157 = vmatpush.xpose.msra.mxu0 %v102_v12  ;;  %626 = vst.msk [vmem:[%s1488_s4] sm:$0xff] %vm625_vm0, %v913_v1 }
  0x40   :  { %322 = vadd.xlane.f32.xlu0 %v291_v11  ;;  %222 = vmatpush.xpose.msra.mxu1 %v134_v17  ;;  %627 = vst.msk [vmem:[%s1488_s4 + $0x8] sm:$0xff] %vm625_vm0, %v913_v1 }
  0x41   :  { %777 = vmatpush.xpose.msra.mxu2 %v102_v12  ;;  %793 = vmatpush.xpose.msra.mxu3 %v134_v17  ;;  %629 = vst.msk [vmem:[%s1488_s4 + $0x18] sm:$0xff] %vm625_vm0, %v913_v1 }
  0x42   :  { %630 = vst.msk [vmem:[%s1488_s4 + $0x20] sm:$0xff] %vm625_vm0, %v913_v1 }
  0x43   :  { %158 = vmatpush.xpose.msra.mxu0 %v101_v20  ;;  %631 = vst.msk [vmem:[%s1488_s4 + $0x28] sm:$0xff] %vm625_vm0, %v913_v1 }
  0x44   :  { %223 = vmatpush.xpose.msra.mxu1 %v133_v21  ;;  %632 = vst.msk [vmem:[%s1488_s4 + $0x30] sm:$0xff] %vm625_vm0, %v913_v1 }
  0x45   :  { %778 = vmatpush.xpose.msra.mxu2 %v101_v20  ;;  %794 = vmatpush.xpose.msra.mxu3 %v133_v21  ;;  %633 = vst.msk [vmem:[%s1488_s4 + $0x38] sm:$0xff] %vm625_vm0, %v913_v1 }
  0x46   :  { %634 = vst.msk [vmem:[%s1488_s4 + $0x40] sm:$0xff] %vm625_vm0, %v913_v1 }
  0x47   :  { %159 = vmatpush.xpose.msra.mxu0 %v100_v22  ;;  %635 = vst.msk [vmem:[%s1488_s4 + $0x48] sm:$0xff] %vm625_vm0, %v913_v1 }
  0x48   :  { %224 = vmatpush.xpose.msra.mxu1 %v132_v23  ;;  %636 = vst.msk [vmem:[%s1488_s4 + $0x50] sm:$0xff] %vm625_vm0, %v913_v1 }
  0x49   :  { %779 = vmatpush.xpose.msra.mxu2 %v100_v22  ;;  %795 = vmatpush.xpose.msra.mxu3 %v132_v23  ;;  %637 = vst.msk [vmem:[%s1488_s4 + $0x58] sm:$0xff] %vm625_vm0, %v913_v1 }
  0x4a   :  { %638 = vst.msk [vmem:[%s1488_s4 + $0x60] sm:$0xff] %vm625_vm0, %v913_v1 }
  0x4b   :  { %160 = vmatpush.xpose.msra.mxu0 %v99_v24  ;;  %639 = vst.msk [vmem:[%s1488_s4 + $0x68] sm:$0xff] %vm625_vm0, %v913_v1 }
  0x4c   :  { %225 = vmatpush.xpose.msra.mxu1 %v131_v25  ;;  %640 = vst.msk [vmem:[%s1488_s4 + $0x70] sm:$0xff] %vm625_vm0, %v913_v1  ;;  %v665_v0 = vld [vmem:[%s1488_s4 + $0x38] sm:$0xff] }
  0x4d   :  { %780 = vmatpush.xpose.msra.mxu2 %v99_v24  ;;  %796 = vmatpush.xpose.msra.mxu3 %v131_v25  ;;  %641 = vst.msk [vmem:[%s1488_s4 + $0x78] sm:$0xff] %vm625_vm0, %v913_v1 }
  0x4e   :  { %642 = vst.msk [vmem:[%s1489_s5] sm:$0xff] %vm625_vm0, %v913_v1 }
  0x4f   :  { %161 = vmatpush.xpose.msra.mxu0 %v98_v30  ;;  %643 = vst.msk [vmem:[%s1489_s5 + $0x8] sm:$0xff] %vm625_vm0, %v913_v1 }
  0x50   :  { %226 = vmatpush.xpose.msra.mxu1 %v130_v33  ;;  %644 = vst.msk [vmem:[%s1489_s5 + $0x10] sm:$0xff] %vm625_vm0, %v913_v1  ;;  %v669_v63 = vld [vmem:[%s1488_s4 + $0x58] sm:$0xff] }
  0x51   :  { %781 = vmatpush.xpose.msra.mxu2 %v98_v30  ;;  %797 = vmatpush.xpose.msra.mxu3 %v130_v33  ;;  %645 = vst.msk [vmem:[%s1489_s5 + $0x18] sm:$0xff] %vm625_vm0, %v913_v1 }
  0x52   :  { %162 = vmatmul.f32.vlgmr.msra.gmra.mxu0 %v968_v8  ;;  %646 = vst.msk [vmem:[%s1489_s5 + $0x20] sm:$0xff] %vm625_vm0, %v913_v1 }
  0x53   :  { %227 = vmatmul.f32.vlgmr.msra.gmra.mxu1 %v970_v9  ;;  %647 = vst.msk [vmem:[%s1489_s5 + $0x28] sm:$0xff] %vm625_vm0, %v913_v1 }
  0x54   :  { %186 = vmatmul.f32.vlgmr.msra.gmra.mxu2 %v992_v26  ;;  %251 = vmatmul.f32.vlgmr.msra.gmra.mxu3 %v994_v27  ;;  %648 = vst.msk [vmem:[%s1489_s5 + $0x30] sm:$0xff] %vm625_vm0, %v913_v1 }
  0x55   :  { %649 = vst.msk [vmem:[%s1489_s5 + $0x38] sm:$0xff] %vm625_vm0, %v913_v1 }
  0x56   :  { %650 = vst.msk [vmem:[%s1489_s5 + $0x40] sm:$0xff] %vm625_vm0, %v913_v1 }
  0x57   :  { %651 = vst.msk [vmem:[%s1489_s5 + $0x48] sm:$0xff] %vm625_vm0, %v913_v1 }
  0x58   :  { %652 = vst.msk [vmem:[%s1489_s5 + $0x50] sm:$0xff] %vm625_vm0, %v913_v1 }
  0x59   :  { %653 = vst.msk [vmem:[%s1489_s5 + $0x58] sm:$0xff] %vm625_vm0, %v913_v1 }
  0x5a   :  { %165 = vmatmul.f32.gmra.mxu0 %v982_v18  ;;  %654 = vst.msk [vmem:[%s1489_s5 + $0x60] sm:$0xff] %vm625_vm0, %v913_v1 }
  0x5b   :  { %230 = vmatmul.f32.gmra.mxu1 %v984_v19  ;;  %655 = vst.msk [vmem:[%s1489_s5 + $0x68] sm:$0xff] %vm625_vm0, %v913_v1 }
  0x5c   :  { %189 = vmatmul.f32.gmra.mxu2 %v1018_v44  ;;  %254 = vmatmul.f32.gmra.mxu3 %v1020_v45  ;;  %656 = vst.msk [vmem:[%s1489_s5 + $0x70] sm:$0xff] %vm625_vm0, %v913_v1 }
  0x5d   :  { %657 = vst.msk [vmem:[%s1489_s5 + $0x78] sm:$0xff] %vm625_vm0, %v913_v1  ;;  %v667_v1 = vld [vmem:[%s1488_s4 + $0x48] sm:$0xff] }
  0x62   :  { %168 = vmatmul.f32.gmra.mxu0 %v960_v4 }
  0x63   :  { %233 = vmatmul.f32.gmra.mxu1 %v962_v5 }
  0x64   :  { %192 = vmatmul.f32.gmra.mxu2 %v1014_v41  ;;  %257 = vmatmul.f32.gmra.mxu3 %v1016_v42 }
  0x6a   :  { %171 = vmatmul.f32.gmra.mxu0 %v978_v15 }
  0x6b   :  { %236 = vmatmul.f32.gmra.mxu1 %v980_v16 }
  0x6c   :  { %195 = vmatmul.f32.gmra.mxu2 %v1010_v39  ;;  %260 = vmatmul.f32.gmra.mxu3 %v1012_v40 }
  0x72   :  { %174 = vmatmul.f32.gmra.mxu0 %v956_v2 }
  0x73   :  { %239 = vmatmul.f32.gmra.mxu1 %v958_v3 }
  0x74   :  { %198 = vmatmul.f32.gmra.mxu2 %v1036_v57  ;;  %263 = vmatmul.f32.gmra.mxu3 %v1038_v58 }
  0x7a   :  { %177 = vmatmul.f32.gmra.mxu0 %v974_v13 }
  0x7b   :  { %242 = vmatmul.f32.gmra.mxu1 %v976_v14 }
  0x7c   :  { %201 = vmatmul.f32.gmra.mxu2 %v1032_v54  ;;  %266 = vmatmul.f32.gmra.mxu3 %v1034_v55 }
  0x82   :  { %180 = vmatmul.f32.gmra.mxu0 %v1000_v31 }
  0x83   :  { %245 = vmatmul.f32.gmra.mxu1 %v1002_v32 }
  0x84   :  { %204 = vmatmul.f32.gmra.mxu2 %v1028_v52  ;;  %269 = vmatmul.f32.gmra.mxu3 %v1030_v53 }
  0x89   :  { %v301_v2 = vpop.xlane.xlu2 %300 }
  0x8a   :  { %v297_v3 = vpop.xlane.xlu1 %296  ;;  %183 = vmatmul.f32.gmra.mxu0 %v996_v28  ;;  %v465_v28 = vsub.f32 -1e+30, %v301_v2 }
  0x8b   :  { %v463_v4 = vsub.f32 -1e+30, %v297_v3  ;;  %v1080_v5 = vpop.xlane.xlu0 %292  ;;  %248 = vmatmul.f32.gmra.mxu1 %v998_v29 }
  0x8c   :  { %207 = vmatmul.f32.gmra.mxu2 %v1046_v6  ;;  %272 = vmatmul.f32.gmra.mxu3 %v1048_v7  ;;  %v481_v35 = vmax.f32 %v465_v28, 0.0 }
  0x8d   :  { %v479_v8 = vmax.f32 %v463_v4, 0.0 }
  0x8f   :  { %561 = vmax.xlane.f32.xlu0 %v479_v8 }
  0x91   :  { %v303_v9 = vpop.xlane.xlu2 %302 }
  0x92   :  { %v299_v13 = vpop.xlane.xlu1 %298  ;;  %v466_v14 = vsub.f32 -1e+30, %v303_v9 }
  0x93   :  { %v464_v15 = vsub.f32 -1e+30, %v299_v13  ;;  %v295_v16 = vpop.xlane.xlu0 %294 }
  0x94   :  { %v462_v18 = vsub.f32 -1e+30, %v295_v16  ;;  %v482_v19 = vmax.f32 %v466_v14, 0.0 }
  0x95   :  { %v480_v26 = vmax.f32 %v464_v15, 0.0 }
  0x96   :  { %v478_v27 = vmax.f32 %v462_v18, 0.0 }
  0x97   :  { %563 = vmax.xlane.f32.xlu1 %v480_v26  ;;  %567 = vmax.xlane.f32.xlu0 %v482_v19 }
  0x98   :  { %559 = vmax.xlane.f32.xlu2 %v478_v27 }
  0x99   :  { %v309_v31 = vpop.xlane.xlu2 %308 }
  0x9a   :  { %v307_v32 = vpop.xlane.xlu1 %306  ;;  %v469_v29 = vsub.f32 -1e+30, %v309_v31 }
  0x9b   :  { %v305_v34 = vpop.xlane.xlu0 %304  ;;  %v468_v39 = vsub.f32 -1e+30, %v307_v32 }
  0x9c   :  { %v467_v36 = vsub.f32 -1e+30, %v305_v34  ;;  %v485_v37 = vmax.f32 %v469_v29, 0.0  ;;  %v660_v29 = vld [vmem:[%s1488_s4 + $0x10] sm:$0xff] }
  0x9d   :  { %v484_v44 = vmax.f32 %v468_v39, 0.0 }
  0x9e   :  { %v483_v38 = vmax.f32 %v467_v36, 0.0 }
  0x9f   :  { %573 = vmax.xlane.f32.xlu0 %v485_v37 }
  0xa0   :  { %565 = vmax.xlane.f32.xlu2 %v481_v35  ;;  %569 = vmax.xlane.f32.xlu1 %v483_v38 }
  0xa1   :  { %v315_v40 = vpop.xlane.xlu2 %314 }
  0xa2   :  { %v472_v41 = vsub.f32 -1e+30, %v315_v40  ;;  %v313_v43 = vpop.xlane.xlu1 %312  ;;  %v661_v40 = vld [vmem:[%s1488_s4 + $0x18] sm:$0xff] }
  0xa3   :  { %v311_v42 = vpop.xlane.xlu0 %310  ;;  %v471_v48 = vsub.f32 -1e+30, %v313_v43 }
  0xa4   :  { %v470_v45 = vsub.f32 -1e+30, %v311_v42  ;;  %v1086_v46 = vmax.f32 %v472_v41, 0.0  ;;  %v663_v41 = vld [vmem:[%s1488_s4 + $0x28] sm:$0xff] }
  0xa5   :  { %v487_v52 = vmax.f32 %v471_v48, 0.0 }
  0xa6   :  { %v486_v47 = vmax.f32 %v470_v45, 0.0 }
  0xa7   :  { %579 = vmax.xlane.f32.xlu0 %v1086_v46 }
  0xa8   :  { %571 = vmax.xlane.f32.xlu2 %v484_v44  ;;  %575 = vmax.xlane.f32.xlu1 %v486_v47 }
  0xa9   :  { %v321_v49 = vpop.xlane.xlu2 %320 }
  0xaa   :  { %v475_v50 = vsub.f32 -1e+30, %v321_v49  ;;  %v319_v55 = vpop.xlane.xlu1 %318 }
  0xab   :  { %v317_v51 = vpop.xlane.xlu0 %316  ;;  %v474_v57 = vsub.f32 -1e+30, %v319_v55  ;;  %v662_v55 = vld [vmem:[%s1488_s4 + $0x20] sm:$0xff] }
  0xac   :  { %v473_v53 = vsub.f32 -1e+30, %v317_v51  ;;  %v1089_v54 = vmax.f32 %v475_v50, 0.0 }
  0xad   :  { %v490_v59 = vmax.f32 %v474_v57, 0.0 }
  0xae   :  { %v489_v56 = vmax.f32 %v473_v53, 0.0  ;;  %v666_v53 = vld [vmem:[%s1488_s4 + $0x40] sm:$0xff] }
  0xaf   :  { %585 = vmax.xlane.f32.xlu0 %v1089_v54 }
  0xb0   :  { %577 = vmax.xlane.f32.xlu2 %v487_v52  ;;  %581 = vmax.xlane.f32.xlu1 %v489_v56 }
  0xb3   :  { %v323_v58 = vpop.xlane.xlu0 %322 }
  0xb4   :  { %v476_v60 = vsub.f32 -1e+30, %v323_v58 }
  0xb6   :  { %v1092_v61 = vmax.f32 %v476_v60, 0.0 }
  0xb7   :  { %591 = vmax.xlane.f32.xlu0 %v478_v27 }
  0xb8   :  { %583 = vmax.xlane.f32.xlu2 %v490_v59  ;;  %587 = vmax.xlane.f32.xlu1 %v1092_v61 }
  0xbf   :  { %597 = vmax.xlane.f32.xlu0 %v481_v35 }
  0xc0   :  { %595 = vmax.xlane.f32.xlu2 %v480_v26  ;;  %593 = vmax.xlane.f32.xlu1 %v479_v8 }
  0xc7   :  { %603 = vmax.xlane.f32.xlu0 %v484_v44  ;;  %v659_v44 = vld [vmem:[%s1488_s4 + $0x8] sm:$0xff] }
  0xc8   :  { %601 = vmax.xlane.f32.xlu2 %v483_v38  ;;  %599 = vmax.xlane.f32.xlu1 %v482_v19 }
  0xcf   :  { %609 = vmax.xlane.f32.xlu0 %v487_v52  ;;  %v163_v6 = vpop.f32.mrf.mxu0 }
  0xd0   :  { %607 = vmax.xlane.f32.xlu2 %v486_v47  ;;  %605 = vmax.xlane.f32.xlu1 %v485_v37  ;;  %v228_v7 = vpop.f32.mrf.mxu1  ;;  %v429_v10 = vsel %vm413_vm3, -1e+30, %v163_v6 }
  0xd1   :  { %v493_v11 = vsel %vm413_vm3, -1e+30, %v228_v7  ;;  %v445_v12 = vadd.f32 0.2, %v429_v10 }
  0xd2   :  { %v509_v17 = vadd.f32 0.2, %v493_v11 }
  0xd3   :  { %v461_v25 = vsub.f32 %v445_v12, %v1080_v5 }
  0xd4   :  { %v525_v24 = vsub.f32 %v509_v17, %v1080_v5 }
  0xd5   :  { %v477_v33 = vmax.f32 %v461_v25, 0.0 }
  0xd6   :  { %v541_v30 = vmax.f32 %v525_v24, 0.0 }
  0xd7   :  { %615 = vmax.xlane.f32.xlu0 %v490_v59  ;;  %v187_v20 = vpop.f32.mrf.mxu2  ;;  %v252_v21 = vpop.f32.mrf.mxu3 }
  0xd8   :  { %613 = vmax.xlane.f32.xlu2 %v489_v56  ;;  %611 = vmax.xlane.f32.xlu1 %v1086_v46  ;;  %v166_v22 = vpop.f32.mrf.mxu0  ;;  %v231_v23 = vpop.f32.mrf.mxu1  ;;  %v664_v56 = vld [vmem:[%s1488_s4 + $0x30] sm:$0xff] }
  0xd9   :  { %v672_v20 = vld [vmem:[%s1488_s4 + $0x70] sm:$0xff]  ;;  %v670_v22 = vld [vmem:[%s1488_s4 + $0x60] sm:$0xff] }
  0xda   :  { %v668_v21 = vld [vmem:[%s1488_s4 + $0x50] sm:$0xff] }
  0xdf   :  { %v190_v2 = vpop.f32.mrf.mxu2  ;;  %v255_v3 = vpop.f32.mrf.mxu3 }
  0xe0   :  { %589 = vmax.xlane.f32.xlu2 %v541_v30  ;;  %557 = vmax.xlane.f32.xlu1 %v477_v33  ;;  %v169_v4 = vpop.f32.mrf.mxu0  ;;  %v234_v5 = vpop.f32.mrf.mxu1  ;;  %v708_v3 = vld [vmem:[%s1489_s5 + $0x8] sm:$0xff] }
  0xe1   :  { %v671_v4 = vld [vmem:[%s1488_s4 + $0x68] sm:$0xff]  ;;  %v673_v5 = vld [vmem:[%s1488_s4 + $0x78] sm:$0xff] }
  0xe7   :  { %v193_v8 = vpop.f32.mrf.mxu2  ;;  %v258_v9 = vpop.f32.mrf.mxu3 }
  0xe8   :  { %619 = vmax.xlane.f32.xlu2 %v1092_v61  ;;  %617 = vmax.xlane.f32.xlu1 %v1089_v54  ;;  %v172_v13 = vpop.f32.mrf.mxu0  ;;  %v237_v14 = vpop.f32.mrf.mxu1 }
  0xef   :  { %v196_v15 = vpop.f32.mrf.mxu2  ;;  %v261_v16 = vpop.f32.mrf.mxu3 }
  0xf0   :  { %v175_v18 = vpop.f32.mrf.mxu0  ;;  %v240_v19 = vpop.f32.mrf.mxu1 }
  0xf1   :  { %v711_v18 = vld [vmem:[%s1489_s5 + $0x20] sm:$0xff]  ;;  %v710_v19 = vld [vmem:[%s1489_s5 + $0x18] sm:$0xff] }
  0xf7   :  { %v199_v26 = vpop.f32.mrf.mxu2  ;;  %v264_v27 = vpop.f32.mrf.mxu3 }
  0xf8   :  { %v178_v28 = vpop.f32.mrf.mxu0  ;;  %v243_v31 = vpop.f32.mrf.mxu1  ;;  %v709_v26 = vld [vmem:[%s1489_s5 + $0x10] sm:$0xff] }
  0xff   :  { %v202_v32 = vpop.f32.mrf.mxu2  ;;  %v267_v34 = vpop.f32.mrf.mxu3 }
 0x100   :  { %v181_v35 = vpop.f32.mrf.mxu0  ;;  %v246_v36 = vpop.f32.mrf.mxu1 }
 0x101   :  { %v714_v35 = vld [vmem:[%s1489_s5 + $0x38] sm:$0xff]  ;;  %v713_v36 = vld [vmem:[%s1489_s5 + $0x30] sm:$0xff] }
 0x102   :  { %v562_v37 = vpop.xlane.xlu0 %561 }
 0x103   :  { %v676_v38 = vmax.f32 %v660_v29, %v562_v37  ;;  %v712_v37 = vld [vmem:[%s1489_s5 + $0x28] sm:$0xff] }
 0x105   :  { %693 = vst.msk [vmem:[%s1488_s4 + $0x10] sm:$0xff] %vm625_vm0, %v676_v38 }
 0x107   :  { %v205_v39 = vpop.f32.mrf.mxu2  ;;  %v270_v42 = vpop.f32.mrf.mxu3 }
 0x108   :  { %v184_v43 = vpop.f32.mrf.mxu0  ;;  %v249_v45 = vpop.f32.mrf.mxu1 }
 0x109   :  { %v716_v45 = vld [vmem:[%s1489_s5 + $0x48] sm:$0xff] }
 0x10a   :  { %v564_v46 = vpop.xlane.xlu1 %563  ;;  %v568_v47 = vpop.xlane.xlu0 %567 }
 0x10b   :  { %v677_v48 = vmax.f32 %v661_v40, %v564_v46  ;;  %v560_v49 = vpop.xlane.xlu2 %559  ;;  %v679_v50 = vmax.f32 %v663_v41, %v568_v47  ;;  %v715_v46 = vld [vmem:[%s1489_s5 + $0x40] sm:$0xff] }
 0x10c   :  { %v675_v51 = vmax.f32 %v659_v44, %v560_v49  ;;  %v717_v44 = vld [vmem:[%s1489_s5 + $0x50] sm:$0xff] }
 0x10d   :  { %694 = vst.msk [vmem:[%s1488_s4 + $0x18] sm:$0xff] %vm625_vm0, %v677_v48 }
 0x10e   :  { %692 = vst.msk [vmem:[%s1488_s4 + $0x8] sm:$0xff] %vm625_vm0, %v675_v51 }
 0x10f   :  { %696 = vst.msk [vmem:[%s1488_s4 + $0x28] sm:$0xff] %vm625_vm0, %v679_v50  ;;  %v208_v52 = vpop.f32.mrf.mxu2  ;;  %v273_v54 = vpop.f32.mrf.mxu3 }
 0x110   :  { %v719_v54 = vld [vmem:[%s1489_s5 + $0x60] sm:$0xff] }
 0x112   :  { %v574_v57 = vpop.xlane.xlu0 %573 }
 0x113   :  { %v566_v58 = vpop.xlane.xlu2 %565  ;;  %v570_v59 = vpop.xlane.xlu1 %569  ;;  %v682_v60 = vmax.f32 %v666_v53, %v574_v57  ;;  %v720_v53 = vld [vmem:[%s1489_s5 + $0x68] sm:$0xff] }
 0x114   :  { %v678_v61 = vmax.f32 %v662_v55, %v566_v58  ;;  %v680_v62 = vmax.f32 %v664_v56, %v570_v59  ;;  %v718_v55 = vld [vmem:[%s1489_s5 + $0x58] sm:$0xff] }
 0x115   :  { %699 = vst.msk [vmem:[%s1488_s4 + $0x40] sm:$0xff] %vm625_vm0, %v682_v60 }
 0x116   :  { %695 = vst.msk [vmem:[%s1488_s4 + $0x20] sm:$0xff] %vm625_vm0, %v678_v61 }
 0x117   :  { %697 = vst.msk [vmem:[%s1488_s4 + $0x30] sm:$0xff] %vm625_vm0, %v680_v62  ;;  %v707_v62 = vld [vmem:[%s1489_s5] sm:$0xff] }
 0x11a   :  { %v580_v6 = vpop.xlane.xlu0 %579 }
 0x11b   :  { %v572_v7 = vpop.xlane.xlu2 %571  ;;  %v576_v10 = vpop.xlane.xlu1 %575  ;;  %v685_v11 = vmax.f32 %v669_v63, %v580_v6  ;;  %v658_v63 = vld [vmem:[%s1488_s4] sm:$0xff] }
 0x11c   :  { %v681_v12 = vmax.f32 %v665_v0, %v572_v7  ;;  %v683_v17 = vmax.f32 %v667_v1, %v576_v10  ;;  %v722_v10 = vld [vmem:[%s1489_s5 + $0x78] sm:$0xff] }
 0x11d   :  { %702 = vst.msk [vmem:[%s1488_s4 + $0x58] sm:$0xff] %vm625_vm0, %v685_v11  ;;  %v721_v11 = vld [vmem:[%s1489_s5 + $0x70] sm:$0xff] }
 0x11e   :  { %698 = vst.msk [vmem:[%s1488_s4 + $0x38] sm:$0xff] %vm625_vm0, %v681_v12 }
 0x11f   :  { %700 = vst.msk [vmem:[%s1488_s4 + $0x48] sm:$0xff] %vm625_vm0, %v683_v17 }
 0x122   :  { %v586_v23 = vpop.xlane.xlu0 %585 }
 0x123   :  { %v578_v24 = vpop.xlane.xlu2 %577  ;;  %v582_v25 = vpop.xlane.xlu1 %581  ;;  %v688_v30 = vmax.f32 %v672_v20, %v586_v23 }
 0x124   :  { %v684_v33 = vmax.f32 %v668_v21, %v578_v24  ;;  %v686_v2 = vmax.f32 %v670_v22, %v582_v25 }
 0x125   :  { %705 = vst.msk [vmem:[%s1488_s4 + $0x70] sm:$0xff] %vm625_vm0, %v688_v30 }
 0x126   :  { %701 = vst.msk [vmem:[%s1488_s4 + $0x50] sm:$0xff] %vm625_vm0, %v684_v33 }
 0x127   :  { %703 = vst.msk [vmem:[%s1488_s4 + $0x60] sm:$0xff] %vm625_vm0, %v686_v2 }
 0x12a   :  { %v592_v8 = vpop.xlane.xlu0 %591 }
 0x12b   :  { %v584_v9 = vpop.xlane.xlu2 %583  ;;  %v588_v13 = vpop.xlane.xlu1 %587  ;;  %v724_v14 = vmax.f32 %v708_v3, %v592_v8 }
 0x12c   :  { %v687_v15 = vmax.f32 %v671_v4, %v584_v9  ;;  %v689_v16 = vmax.f32 %v673_v5, %v588_v13 }
 0x12d   :  { %740 = vst.msk [vmem:[%s1489_s5 + $0x8] sm:$0xff] %vm625_vm0, %v724_v14 }
 0x12e   :  { %704 = vst.msk [vmem:[%s1488_s4 + $0x68] sm:$0xff] %vm625_vm0, %v687_v15 }
 0x12f   :  { %706 = vst.msk [vmem:[%s1488_s4 + $0x78] sm:$0xff] %vm625_vm0, %v689_v16 }
 0x132   :  { %v598_v27 = vpop.xlane.xlu0 %597 }
 0x133   :  { %v596_v28 = vpop.xlane.xlu2 %595  ;;  %v594_v31 = vpop.xlane.xlu1 %593  ;;  %v727_v32 = vmax.f32 %v711_v18, %v598_v27 }
 0x134   :  { %v726_v29 = vmax.f32 %v710_v19, %v596_v28  ;;  %v725_v34 = vmax.f32 %v709_v26, %v594_v31 }
 0x135   :  { %743 = vst.msk [vmem:[%s1489_s5 + $0x20] sm:$0xff] %vm625_vm0, %v727_v32 }
 0x136   :  { %742 = vst.msk [vmem:[%s1489_s5 + $0x18] sm:$0xff] %vm625_vm0, %v726_v29 }
 0x137   :  { %741 = vst.msk [vmem:[%s1489_s5 + $0x10] sm:$0xff] %vm625_vm0, %v725_v34 }
 0x13a   :  { %v604_v38 = vpop.xlane.xlu0 %603 }
 0x13b   :  { %v602_v39 = vpop.xlane.xlu2 %601  ;;  %v600_v40 = vpop.xlane.xlu1 %599  ;;  %v730_v41 = vmax.f32 %v714_v35, %v604_v38 }
 0x13c   :  { %v729_v42 = vmax.f32 %v713_v36, %v602_v39  ;;  %v728_v43 = vmax.f32 %v712_v37, %v600_v40 }
 0x13d   :  { %746 = vst.msk [vmem:[%s1489_s5 + $0x38] sm:$0xff] %vm625_vm0, %v730_v41 }
 0x13e   :  { %745 = vst.msk [vmem:[%s1489_s5 + $0x30] sm:$0xff] %vm625_vm0, %v729_v42 }
 0x13f   :  { %744 = vst.msk [vmem:[%s1489_s5 + $0x28] sm:$0xff] %vm625_vm0, %v728_v43 }
 0x142   :  { %v610_v47 = vpop.xlane.xlu0 %609 }
 0x143   :  { %v608_v48 = vpop.xlane.xlu2 %607  ;;  %v606_v49 = vpop.xlane.xlu1 %605  ;;  %v733_v50 = vmax.f32 %v717_v44, %v610_v47 }
 0x144   :  { %v732_v51 = vmax.f32 %v716_v45, %v608_v48  ;;  %v731_v52 = vmax.f32 %v715_v46, %v606_v49 }
 0x145   :  { %749 = vst.msk [vmem:[%s1489_s5 + $0x50] sm:$0xff] %vm625_vm0, %v733_v50 }
 0x146   :  { %748 = vst.msk [vmem:[%s1489_s5 + $0x48] sm:$0xff] %vm625_vm0, %v732_v51 }
 0x147   :  { %747 = vst.msk [vmem:[%s1489_s5 + $0x40] sm:$0xff] %vm625_vm0, %v731_v52 }
 0x14a   :  { %v616_v56 = vpop.xlane.xlu0 %615 }
 0x14b   :  { %v614_v57 = vpop.xlane.xlu2 %613  ;;  %v612_v58 = vpop.xlane.xlu1 %611  ;;  %v736_v59 = vmax.f32 %v720_v53, %v616_v56 }
 0x14c   :  { %v735_v60 = vmax.f32 %v719_v54, %v614_v57  ;;  %v734_v61 = vmax.f32 %v718_v55, %v612_v58 }
 0x14d   :  { %752 = vst.msk [vmem:[%s1489_s5 + $0x68] sm:$0xff] %vm625_vm0, %v736_v59 }
 0x14e   :  { %751 = vst.msk [vmem:[%s1489_s5 + $0x60] sm:$0xff] %vm625_vm0, %v735_v60 }
 0x14f   :  { %750 = vst.msk [vmem:[%s1489_s5 + $0x58] sm:$0xff] %vm625_vm0, %v734_v61 }
 0x153   :  { %v590_v0 = vpop.xlane.xlu2 %589  ;;  %v558_v1 = vpop.xlane.xlu1 %557 }
 0x154   :  { %v723_v6 = vmax.f32 %v707_v62, %v590_v0  ;;  %v674_v7 = vmax.f32 %v658_v63, %v558_v1 }
 0x156   :  { %739 = vst.msk [vmem:[%s1489_s5] sm:$0xff] %vm625_vm0, %v723_v6 }
 0x157   :  { %691 = vst.msk [vmem:[%s1488_s4] sm:$0xff] %vm625_vm0, %v674_v7 }
 0x15b   :  { %v620_v12 = vpop.xlane.xlu2 %619  ;;  %v618_v17 = vpop.xlane.xlu1 %617 }
 0x15c   :  { %v738_v20 = vmax.f32 %v722_v10, %v620_v12  ;;  %v737_v21 = vmax.f32 %v721_v11, %v618_v17 }
 0x15e   :  { %754 = vst.msk [vmem:[%s1489_s5 + $0x78] sm:$0xff] %vm625_vm0, %v738_v20 }
 0x15f   :  { %753 = vst.msk [vmem:[%s1489_s5 + $0x70] sm:$0xff] %vm625_vm0, %v737_v21 }
 0x160   :  { %763 = vsyncpa [#allocation3], 1 }
 0x161   :  { %764 = vsyncpa [#allocation5], 1 }
 0x162   :  { %765 = vsyncpa [#allocation8], 1 }

</bundles_post_ra>
